<compile_context>
chip_gen: v7x
topology: tpu7x:2x2x1
jax: 0.10.0
libtpu: 0.0.40
codegen_flags: <defaults>
</compile_context>

<pallas_src>
import jax
import jax.numpy as jnp
from jax.experimental import pallas as pl
from jax.experimental.pallas import tpu as pltpu


def qnet_kernel(x_ref, w1_ref, b1_ref, w2_ref, b2_ref, wh_ref, bh_ref, o_ref):
    """One batch tile of the Q-network.

    x_ref  : (tile_b, state_dim) f32   -- streamed per grid step
    w*_ref : (fan_in, fan_out)   f32   -- constant block index -> VMEM-resident
    b*_ref : (1, fan_out)        f32
    o_ref  : (tile_b, action_dim) f32  -- true-width output (no lane padding)
    """
    x = x_ref[...]
    h = jnp.maximum(
        jnp.dot(x, w1_ref[...], preferred_element_type=jnp.float32) + b1_ref[...], 0.0)
    h = jnp.maximum(
        jnp.dot(h, w2_ref[...], preferred_element_type=jnp.float32) + b2_ref[...], 0.0)
    o_ref[...] = (
        jnp.dot(h, wh_ref[...], preferred_element_type=jnp.float32) + bh_ref[...])


def _round_up(n, m):
    return (n + m - 1) // m * m


def qnet_forward(x, params, *, tile_b=1024):
    """x: (B, state_dim) float32. params: dict of (in,out) weights and (1,out) biases."""
    B, state_dim = x.shape
    h1 = params["w1"].shape[1]
    h2 = params["w2"].shape[1]
    action_dim = params["wh"].shape[1]

    # Row tiling: multiple of 8 sublanes; large tiles amortize per-grid-step overhead.
    tile_b = min(tile_b, _round_up(B, 8))
    b_pad = _round_up(B, tile_b)
    if b_pad != B:
        x = jnp.pad(x, ((0, b_pad - B), (0, 0)))

    const2 = lambda i: (0, 0)  # params: fetched once, VMEM-resident across grid steps

    cost = pl.CostEstimate(
        flops=2 * B * (state_dim * h1 + h1 * h2 + h2 * action_dim),
        transcendentals=0,
        bytes_accessed=4 * (B * state_dim + B * action_dim
                            + state_dim * h1 + h1
                            + h1 * h2 + h2
                            + h2 * action_dim + action_dim),
    )

    out = pl.pallas_call(
        qnet_kernel,
        out_shape=jax.ShapeDtypeStruct((b_pad, action_dim), jnp.float32),
        grid=(b_pad // tile_b,),
        in_specs=[
            # x streams one (tile_b, state_dim) block per grid step.
            pl.BlockSpec((tile_b, state_dim), lambda i: (i, 0)),
            pl.BlockSpec(params["w1"].shape, const2),
            pl.BlockSpec(params["b1"].shape, const2),
            pl.BlockSpec(params["w2"].shape, const2),
            pl.BlockSpec(params["b2"].shape, const2),
            pl.BlockSpec(params["wh"].shape, const2),
            pl.BlockSpec(params["bh"].shape, const2),
        ],
        out_specs=pl.BlockSpec((tile_b, action_dim), lambda i: (i, 0)),
        compiler_params=pltpu.CompilerParams(
            dimension_semantics=("parallel",)),  # batch axis -> both TCs on v7x
        cost_estimate=cost,
    )(x, params["w1"], params["b1"], params["w2"], params["b2"],
      params["wh"], params["bh"])

    if b_pad != B:
        out = out[:B]
    return out


def init_params(key, state_dim, hidden_layers_dim, action_dim):
    """Deterministic init mimicking nn.Linear's uniform(-1/sqrt(fan_in), 1/sqrt(fan_in)).
    Weights are stored (in, out) = transpose of PyTorch's (out, in)."""
    assert len(hidden_layers_dim) == 2, "kernel is written for 2 hidden layers + head"
    dims = [state_dim] + list(hidden_layers_dim) + [action_dim]
    names = ["1", "2", "h"]
    params = {}
    for name, fan_in, fan_out in zip(names, dims[:-1], dims[1:]):
        key, kw, kb = jax.random.split(key, 3)
        bound = 1.0 / jnp.sqrt(jnp.float32(fan_in))
        params["w" + name] = jax.random.uniform(
            kw, (fan_in, fan_out), jnp.float32, -bound, bound)
        params["b" + name] = jax.random.uniform(
            kb, (1, fan_out), jnp.float32, -bound, bound)
    return params


def qnet_reference(x, params):
    """Pure-JAX reference of the PyTorch forward."""
    h = jnp.maximum(x @ params["w1"] + params["b1"], 0.0)
    h = jnp.maximum(h @ params["w2"] + params["b2"], 0.0)
    return h @ params["wh"] + params["bh"]


# TODO(synk): QNet.complete/update (MSELoss + Adam step) are training utilities, not part
# of the forward pass, and are intentionally not implemented as kernels.

if __name__ == "__main__":
    key = jax.random.PRNGKey(0)

    # Pendulum-v0-like shapes (small, deterministic)
    batch = 8
    state_dim = 3
    hidden_layers_dim = [32, 32]
    action_dim = 11

    key, kx, kp = jax.random.split(key, 3)
    x = jax.random.normal(kx, (batch, state_dim), jnp.float32)
    params = init_params(kp, state_dim, hidden_layers_dim, action_dim)

    out = qnet_forward(x, params)
    out = jax.block_until_ready(out)

    ref = qnet_reference(x, params)
    assert out.shape == (batch, action_dim)
    assert jnp.allclose(out, ref, atol=1e-5, rtol=1e-5), "mismatch vs reference"

    print("KERNEL_OK")
</pallas_src>

<mosaic_0001>
module attributes {stable_mosaic.version = 11 : i64} {
  func.func @qnet_kernel(%arg0: i32, %arg1: memref<8x3xf32, #tpu.memory_space<vmem>>, %arg2: memref<3x32xf32, #tpu.memory_space<vmem>>, %arg3: memref<1x32xf32, #tpu.memory_space<vmem>>, %arg4: memref<32x32xf32, #tpu.memory_space<vmem>>, %arg5: memref<1x32xf32, #tpu.memory_space<vmem>>, %arg6: memref<32x11xf32, #tpu.memory_space<vmem>>, %arg7: memref<1x11xf32, #tpu.memory_space<vmem>>, %arg8: memref<8x11xf32, #tpu.memory_space<vmem>>) attributes {dimension_semantics = [#tpu.dimension_semantics<parallel>], iteration_bounds = array<i64: 1>, scalar_prefetch = 0 : i64, scratch_operands = 0 : i64, tpu.core_type = #tpu.core_type<tc>, window_params = [{transform_indices = @transform_0, window_bounds = array<i64: 8, 3>}, {pipeline_mode = #tpu.pipeline_mode<synchronous>, transform_indices = @transform_1, window_bounds = array<i64: 3, 32>}, {pipeline_mode = #tpu.pipeline_mode<synchronous>, transform_indices = @transform_2, window_bounds = array<i64: 1, 32>}, {pipeline_mode = #tpu.pipeline_mode<synchronous>, transform_indices = @transform_3, window_bounds = array<i64: 32, 32>}, {pipeline_mode = #tpu.pipeline_mode<synchronous>, transform_indices = @transform_4, window_bounds = array<i64: 1, 32>}, {pipeline_mode = #tpu.pipeline_mode<synchronous>, transform_indices = @transform_5, window_bounds = array<i64: 32, 11>}, {pipeline_mode = #tpu.pipeline_mode<synchronous>, transform_indices = @transform_6, window_bounds = array<i64: 1, 11>}, {transform_indices = @transform_7, window_bounds = array<i64: 8, 11>}]} {
    %c0 = arith.constant 0 : index
    %c0_0 = arith.constant 0 : index
    %0 = vector.load %arg1[%c0, %c0_0] : memref<8x3xf32, #tpu.memory_space<vmem>>, vector<8x3xf32>
    %c0_1 = arith.constant 0 : index
    %c0_2 = arith.constant 0 : index
    %1 = vector.load %arg2[%c0_1, %c0_2] : memref<3x32xf32, #tpu.memory_space<vmem>>, vector<3x32xf32>
    %cst = arith.constant dense<0.000000e+00> : vector<8x32xf32>
    %2 = tpu.matmul %0, %1, %cst {dimension_numbers = #tpu.dot_dimension_numbers<[1], [0], [0], [1], [0, 0, 1, 1], [], []>} : vector<8x3xf32>, vector<3x32xf32>, vector<8x32xf32> -> vector<8x32xf32>
    %c0_3 = arith.constant 0 : index
    %c0_4 = arith.constant 0 : index
    %3 = vector.load %arg3[%c0_3, %c0_4] : memref<1x32xf32, #tpu.memory_space<vmem>>, vector<1x32xf32>
    %4 = vector.broadcast %3 : vector<1x32xf32> to vector<8x32xf32>
    %5 = arith.addf %2, %4 : vector<8x32xf32>
    %cst_5 = arith.constant 0.000000e+00 : f32
    %6 = vector.broadcast %cst_5 : f32 to vector<8x32xf32>
    %7 = arith.maximumf %5, %6 : vector<8x32xf32>
    %c0_6 = arith.constant 0 : index
    %c0_7 = arith.constant 0 : index
    %8 = vector.load %arg4[%c0_6, %c0_7] : memref<32x32xf32, #tpu.memory_space<vmem>>, vector<32x32xf32>
    %cst_8 = arith.constant dense<0.000000e+00> : vector<8x32xf32>
    %9 = tpu.matmul %7, %8, %cst_8 {dimension_numbers = #tpu.dot_dimension_numbers<[1], [0], [0], [1], [0, 0, 1, 1], [], []>} : vector<8x32xf32>, vector<32x32xf32>, vector<8x32xf32> -> vector<8x32xf32>
    %c0_9 = arith.constant 0 : index
    %c0_10 = arith.constant 0 : index
    %10 = vector.load %arg5[%c0_9, %c0_10] : memref<1x32xf32, #tpu.memory_space<vmem>>, vector<1x32xf32>
    %11 = vector.broadcast %10 : vector<1x32xf32> to vector<8x32xf32>
    %12 = arith.addf %9, %11 : vector<8x32xf32>
    %cst_11 = arith.constant 0.000000e+00 : f32
    %13 = vector.broadcast %cst_11 : f32 to vector<8x32xf32>
    %14 = arith.maximumf %12, %13 : vector<8x32xf32>
    %c0_12 = arith.constant 0 : index
    %c0_13 = arith.constant 0 : index
    %15 = vector.load %arg6[%c0_12, %c0_13] : memref<32x11xf32, #tpu.memory_space<vmem>>, vector<32x11xf32>
    %cst_14 = arith.constant dense<0.000000e+00> : vector<8x11xf32>
    %16 = tpu.matmul %14, %15, %cst_14 {dimension_numbers = #tpu.dot_dimension_numbers<[1], [0], [0], [1], [0, 0, 1, 1], [], []>} : vector<8x32xf32>, vector<32x11xf32>, vector<8x11xf32> -> vector<8x11xf32>
    %c0_15 = arith.constant 0 : index
    %c0_16 = arith.constant 0 : index
    %17 = vector.load %arg7[%c0_15, %c0_16] : memref<1x11xf32, #tpu.memory_space<vmem>>, vector<1x11xf32>
    %18 = vector.broadcast %17 : vector<1x11xf32> to vector<8x11xf32>
    %19 = arith.addf %16, %18 : vector<8x11xf32>
    %c0_17 = arith.constant 0 : index
    %c0_18 = arith.constant 0 : index
    %20 = vector.load %arg8[%c0_17, %c0_18] : memref<8x11xf32, #tpu.memory_space<vmem>>, vector<8x11xf32>
    tpu.vector_store %arg8[%c0_17, %c0_18], %19 {strides = array<i32>} : memref<8x11xf32, #tpu.memory_space<vmem>>, vector<8x11xf32>,
    return
  }
  func.func @transform_0(%arg0: i32) -> (i32, i32) {
    %c0_i32 = arith.constant 0 : i32
    %c0_i32_0 = arith.constant 0 : i32
    return %arg0, %c0_i32 : i32, i32
  }
  func.func @transform_1(%arg0: i32) -> (i32, i32) {
    %c0_i32 = arith.constant 0 : i32
    %c0_i32_0 = arith.constant 0 : i32
    %c0_i32_1 = arith.constant 0 : i32
    return %c0_i32, %c0_i32_0 : i32, i32
  }
  func.func @transform_2(%arg0: i32) -> (i32, i32) {
    %c0_i32 = arith.constant 0 : i32
    %c0_i32_0 = arith.constant 0 : i32
    %c0_i32_1 = arith.constant 0 : i32
    return %c0_i32, %c0_i32_0 : i32, i32
  }
  func.func @transform_3(%arg0: i32) -> (i32, i32) {
    %c0_i32 = arith.constant 0 : i32
    %c0_i32_0 = arith.constant 0 : i32
    %c0_i32_1 = arith.constant 0 : i32
    return %c0_i32, %c0_i32_0 : i32, i32
  }
  func.func @transform_4(%arg0: i32) -> (i32, i32) {
    %c0_i32 = arith.constant 0 : i32
    %c0_i32_0 = arith.constant 0 : i32
    %c0_i32_1 = arith.constant 0 : i32
    return %c0_i32, %c0_i32_0 : i32, i32
  }
  func.func @transform_5(%arg0: i32) -> (i32, i32) {
    %c0_i32 = arith.constant 0 : i32
    %c0_i32_0 = arith.constant 0 : i32
    %c0_i32_1 = arith.constant 0 : i32
    return %c0_i32, %c0_i32_0 : i32, i32
  }
  func.func @transform_6(%arg0: i32) -> (i32, i32) {
    %c0_i32 = arith.constant 0 : i32
    %c0_i32_0 = arith.constant 0 : i32
    %c0_i32_1 = arith.constant 0 : i32
    return %c0_i32, %c0_i32_0 : i32, i32
  }
  func.func @transform_7(%arg0: i32) -> (i32, i32) {
    %c0_i32 = arith.constant 0 : i32
    %c0_i32_0 = arith.constant 0 : i32
    return %arg0, %c0_i32 : i32, i32
  }
}

</mosaic_0001>

<bundles_post_ra>
// kernel: tpu_custom_call.1
= control target key start
LH: loop header
LB: loop body
LE: loop exit
PB: predicated region body
PF: predicated region fallthrough
CT: control target
= control target key end

     0   :  { %vm40_vm0 = vcmask 1042432   ;;  %v387_v2 = vmov 0.0   ;;  %vm388_vm1 = vmmov 0   ;;  %vm36_vm2 = vcmask 23552   ;;  %s482_s0 = inlined_call_operand.vmem [shape: f32[8,3], index: 0, kind: input, shape index: {}]   ;;  %s483_s1 = inlined_call_operand.vmem [shape: f32[3,32], index: 1, kind: input, shape index: {}]   ;;  %s484_s2 = inlined_call_operand.vmem [shape: f32[1,32], index: 2, kind: input, shape index: {}]   ;;  %s485_s3 = inlined_call_operand.vmem [shape: f32[32,32], index: 3, kind: input, shape index: {}]   ;;  %s486_s4 = inlined_call_operand.vmem [shape: f32[1,32], index: 4, kind: input, shape index: {}]   ;;  %s487_s5 = inlined_call_operand.vmem [shape: f32[32,11], index: 5, kind: input, shape index: {}]   ;;  %s488_s6 = inlined_call_operand.vmem [shape: f32[1,11], index: 6, kind: input, shape index: {}]   ;;  %s489_s7 = inlined_call_operand.hbm [shape: f32[8,11], index: 7, kind: output, shape index: {}]  }
   0x1   :  { %v28_v0 = vld [vmem:[%s483_s1] sm:$0x7]  ;;  %320 = vmatprep.subr.mxu0 %v387_v2  ;;  %322 = vmatprep.mubr.msk.f32.mxu0 %vm388_vm1, %v387_v2  ;;  %v116_v4 = vld [vmem:[%s485_s3 + $0x8] sm:$0xff]  ;;  %v389_v5 = vmov 0.0|0.0  }
   0x2   :  { %v27_v1 = vld [vmem:[%s482_s0] sm:$0xff]  ;;  %321 = vmatpush3.msk.msra.mxu0 %vm40_vm0, %v28_v0  ;;  %347 = vmatprep.subr.bf16.mxu1 %v389_v5 }
   0x3   :  { %v115_v3 = vld [vmem:[%s485_s3] sm:$0xff] }
   0x4   :  { %v348_v6 = vpack.c.bf16 %v116_v4, %v115_v3 }
   0x5   :  { %12 = vsyncpa [#allocation3], 0  ;;  %323 = vmatmul.mubr.msk.f32.vlgmr.msra.gmra.mrb[0].mxu0 %vm36_vm2, %v27_v1  ;;  %333 = vmatprep.mubr.msk.f32.mxu1 %vm388_vm1, %v387_v2  ;;  %v117_v7 = vld [vmem:[%s485_s3 + $0x10] sm:$0xff]  ;;  %v118_v8 = vld [vmem:[%s485_s3 + $0x18] sm:$0xff]  ;;  %vm126_vm3 = vcmask 261120   ;;  %s390_s23 = smov [#allocation2]  }
   0x6   :  { %349 = vmatpush3.bf16.msra.mxu1 %v348_v6  ;;  %353 = vmatprep.subr.bf16.mxu0 %v389_v5  ;;  %v351_v9 = vpack.c.bf16 %v118_v8, %v117_v7  ;;  %v201_v10 = vld [vmem:[%s487_s5] sm:$0xff]  ;;  %v202_v11 = vld [vmem:[%s487_s5 + $0x8] sm:$0xff]  ;;  %v203_v18 = vld [vmem:[%s487_s5 + $0x10] sm:$0xff]  ;;  %s293_s24 = sshll.u32 %s390_s23, 4  ;;  %vm285_vm4 = vcmask 89088   ;;  %s294_s24 = int_to_ptr.vmem [resolvable:$true] %s293_s24 }
   0x7   :  { %350 = vmatprep.subr.bf16.mxu1 %v389_v5  ;;  %344 = vmatprep.mubr.msk.f32.mxu0 %vm388_vm1, %v387_v2  ;;  %v354_v12 = vpack.c.bf16 %v202_v11, %v201_v10  ;;  %v301_v13 = vld [vmem:[%s484_s2] ss:$0 sm:$0xff]  ;;  %v204_v19 = vld [vmem:[%s487_s5 + $0x18] sm:$0xff]  ;;  %s363_s5 = scalar_lea.vmem %s294_s24, 128  ;;  %p368_p1 = scmp.lt.s32.totalorder %s294_s24, %s294_s24 }
   0x8   :  { %v357_v20 = vpack.c.bf16 %v204_v19, %v203_v18  ;;  %v304_v21 = vld [vmem:[%s486_s4] ss:$0 sm:$0xff]  ;;  %p364_p0 = scmp.ne.s32.totalorder %s294_s24, %s363_s5  ;;  %p369_p2 = scmp.lt.s32.totalorder %s363_s5, %s363_s5 }
   0x9   :  { %355 = vmatpush3.bf16.msra.mxu0 %v354_v12  ;;  %v306_v26 = vld [vmem:[%s488_s6] ss:$0 sm:$0xff] }
   0xa   :  { %352 = vmatpush3.bf16.msra.mxu1 %v351_v9  ;;  %356 = vmatprep.subr.bf16.mxu0 %v389_v5  ;;  %p370_p3 = por %p369_p2, %p368_p1 }
   0xc   :  { %p371_p4 = pnand %p370_p3, %p364_p0 }
   0xd   :  { %358 = vmatpush3.bf16.msra.mxu0 %v357_v20 }
  0xd8   :  { %v110_v14 = vpop.f32.mrb[0].mxu0 }
  0xd9   :  { %v111_v15 = vadd.f32 %v301_v13, %v110_v14  ;;  %v324_v16 = vpop.f32.mrb[1].mxu0 }
  0xdb   :  { %v114_v17 = vmax.f32 %v111_v15, 0.0 }
  0xdd   :  { %334 = vmatmul.mubr.msk.f32.vlgmr.msra.gmra.mrb[0].mxu1 %vm126_vm3, %v114_v17 }
 0x1b0   :  { %v196_v22 = vpop.f32.mrb[0].mxu1 }
 0x1b1   :  { %v197_v23 = vadd.f32 %v304_v21, %v196_v22  ;;  %v335_v24 = vpop.f32.mrb[1].mxu1 }
 0x1b3   :  { %v200_v25 = vmax.f32 %v197_v23, 0.0 }
 0x1b5   :  { %345 = vmatmul.mubr.msk.f32.vlgmr.msra.gmra.mrb[2].mxu0 %vm126_vm3, %v200_v25 }
 0x288   :  { %v281_v27 = vpop.f32.mrb[2].mxu0 }
 0x289   :  { %v282_v28 = vadd.f32 %v306_v26, %v281_v27  ;;  %v346_v29 = vpop.f32.mrb[3].mxu0 }
 0x28b   :  { %286 = vst.msk [vmem:[#allocation2] sm:$0xff] %vm285_vm4, %v282_v28 }
 0x28c   :  { %374 = shalt.err (!%p371_p4)
}
 0x28d   :  { %s375_s26 = scalar_lea.hbm %s489_s7, 128 }
 0x28e   :  { %p376_p5 = scmp.ne.s32.totalorder %s489_s7, %s375_s26  ;;  %p379_p6 = scmp.lt.u32.totalorder %s375_s26, %s489_s7 }
 0x290   :  { %p381_p7 = pnand %p379_p6, %p376_p5 }
 0x292   :  { %384 = shalt.err (!%p381_p7)
}
 0x293   :  { %296 = dma.vmem_to_hbm [thread:$0]  %s294_s24, 128, %s489_s7, [#allocation3]  }
 0x294   :  { %385 = dma.done.wait [#allocation3], 128  }
 0x295   :  { %386 = vsyncadd [#allocation3], 4294967168 }
 0x296   :  { %300 = vsyncpa [#allocation3], 1 }

</bundles_post_ra>
